<compile_context>
chip_gen: v7x
topology: tpu7x:2x2x1
jax: 0.10.0
libtpu: 0.0.40
codegen_flags: <defaults>
</compile_context>

<pallas_src>
import functools
import math

import jax
import jax.numpy as jnp
from jax.experimental import pallas as pl
from jax.experimental.pallas import tpu as pltpu

KH, KW = 3, 3
CIN, COUT = 3, 6
KDIM = KH * KW * CIN          # 27 contracted (kh, kw, ci) taps


def _conv3x3_kernel(x_ref, w_ref, b_ref, o_ref, col_ref, *, h, w):
    """One image per grid step.

    x_ref  : (CIN, h*w)       flat NCHW image (lane-dense)
    w_ref  : (COUT, KDIM)     weights, K ordered as (kh, kw, ci)
    b_ref  : (COUT, 1)        bias
    o_ref  : (COUT, OH*OW)    flat, lane-dense output block (channel-major)
    col_ref: (KDIM, PW)       VMEM scratch: "wide" im2col slab
    """
    oh = h - KH + 1
    ow = w - KW + 1
    pw = (oh - 1) * w + ow    # wide column count (slices stay exactly in-bounds)

    x = x_ref[...]            # (CIN, h*w) f32, loaded once

    # --- im2col: every 3x3 tap is a lane-shifted window of the flat image -------
    for kh in range(KH):
        for kw in range(KW):
            tap = kh * KW + kw
            off = kh * w + kw
            col_ref[pl.ds(tap * CIN, CIN), :] = x[:, off:off + pw]

    # --- single MXU pass over all 27 taps, f32 accumulate -----------------------
    acc = jnp.dot(w_ref[...], col_ref[...], preferred_element_type=jnp.float32)
    acc = (acc + b_ref[...]).astype(o_ref.dtype)   # bias once, outside any loop

    # --- drop kw-wraparound columns: row r's valid outputs live at [r*w, r*w+ow) -
    # Written into the flat lane-dense output slab at [r*ow, (r+1)*ow).
    for r in range(oh):
        o_ref[:, r * ow:(r + 1) * ow] = acc[:, r * w:r * w + ow]


def conv2d_3x3(x_nchw, weight_oihw, bias):
    """Forward pass of ELL: Conv2d(3, 6, k=3, s=1, p=0) on an NCHW input."""
    n, c, h, w = x_nchw.shape
    assert c == CIN
    oh, ow = h - KH + 1, w - KW + 1
    pw = (oh - 1) * w + ow

    # Layout-preserving prep only — no transposes of the activation tensor.
    x_flat = x_nchw.reshape(n, CIN, h * w)
    # Weight / bias prep is 648 B / 24 B — negligible one-time glue.
    w_mat = jnp.transpose(weight_oihw, (0, 2, 3, 1)).reshape(COUT, KDIM)
    b_col = bias.reshape(COUT, 1)

    kernel = functools.partial(_conv3x3_kernel, h=h, w=w)

    out_flat = pl.pallas_call(
        kernel,
        out_shape=jax.ShapeDtypeStruct((n, COUT, oh * ow), jnp.float32),
        grid=(n,),
        in_specs=[
            pl.BlockSpec((None, CIN, h * w), lambda i: (i, 0, 0)),
            pl.BlockSpec((COUT, KDIM), lambda i: (0, 0)),
            pl.BlockSpec((COUT, 1), lambda i: (0, 0)),
        ],
        out_specs=pl.BlockSpec((None, COUT, oh * ow), lambda i: (i, 0, 0)),
        scratch_shapes=[pltpu.VMEM((KDIM, pw), jnp.float32)],
        compiler_params=pltpu.CompilerParams(
            dimension_semantics=("parallel",),
        ),
    )(x_flat, w_mat, b_col)

    # Contiguous split of the last dim — metadata-only, no data movement.
    return out_flat.reshape(n, COUT, oh, ow)


def init_params(key):
    """PyTorch Conv2d default init: uniform(+/- 1/sqrt(fan_in))."""
    kw_, kb_ = jax.random.split(key)
    fan_in = CIN * KH * KW
    bound = 1.0 / math.sqrt(fan_in)
    weight = jax.random.uniform(kw_, (COUT, CIN, KH, KW), jnp.float32, -bound, bound)
    bias = jax.random.uniform(kb_, (COUT,), jnp.float32, -bound, bound)
    return weight, bias


if __name__ == "__main__":
    key = jax.random.PRNGKey(0)
    k_x, k_p = jax.random.split(key)

    x = jax.random.normal(k_x, (2, 3, 16, 16), jnp.float32)   # NCHW input
    weight, bias = init_params(k_p)

    out = conv2d_3x3(x, weight, bias)
    out = jax.block_until_ready(out)

    # sanity check against XLA's conv
    ref = jax.lax.conv_general_dilated(
        x, weight, window_strides=(1, 1), padding="VALID",
        dimension_numbers=("NCHW", "OIHW", "NCHW"),
    ) + bias.reshape(1, COUT, 1, 1)

    assert out.shape == (2, COUT, 14, 14)
    assert jnp.allclose(out, ref, atol=1e-4, rtol=1e-4)

    print("KERNEL_OK")
</pallas_src>

<mosaic_0001>
module attributes {stable_mosaic.version = 11 : i64} {
  func.func @_conv3x3_kernel(%arg0: i32, %arg1: memref<1x3x256xf32, #tpu.memory_space<vmem>>, %arg2: memref<6x27xf32, #tpu.memory_space<vmem>>, %arg3: memref<6x1xf32, #tpu.memory_space<vmem>>, %arg4: memref<1x6x196xf32, #tpu.memory_space<vmem>>, %arg5: memref<27x222xf32, #tpu.memory_space<vmem>>) attributes {dimension_semantics = [#tpu.dimension_semantics<parallel>], iteration_bounds = array<i64: 2>, scalar_prefetch = 0 : i64, scratch_operands = 1 : i64, tpu.core_type = #tpu.core_type<tc>, window_params = [{transform_indices = @transform_0, window_bounds = array<i64: 1, 3, 256>}, {pipeline_mode = #tpu.pipeline_mode<synchronous>, transform_indices = @transform_1, window_bounds = array<i64: 6, 27>}, {pipeline_mode = #tpu.pipeline_mode<synchronous>, transform_indices = @transform_2, window_bounds = array<i64: 6, 1>}, {transform_indices = @transform_3, window_bounds = array<i64: 1, 6, 196>}]} {
    %c0 = arith.constant 0 : index
    %c0_0 = arith.constant 0 : index
    %c0_1 = arith.constant 0 : index
    %0 = vector.load %arg1[%c0, %c0_0, %c0_1] : memref<1x3x256xf32, #tpu.memory_space<vmem>>, vector<1x3x256xf32>
    %1 = vector.shape_cast %0 : vector<1x3x256xf32> to vector<3x256xf32>
    %2 = vector.extract_strided_slice %1 {offsets = [0, 0], sizes = [3, 222], strides = [1, 1]} : vector<3x256xf32> to vector<3x222xf32>
    %c0_2 = arith.constant 0 : index
    %c0_3 = arith.constant 0 : index
    %3 = vector.load %arg5[%c0_2, %c0_3] : memref<27x222xf32, #tpu.memory_space<vmem>>, vector<3x222xf32>
    tpu.vector_store %arg5[%c0_2, %c0_3], %2 {strides = array<i32>} : memref<27x222xf32, #tpu.memory_space<vmem>>, vector<3x222xf32>,
    %4 = vector.extract_strided_slice %1 {offsets = [0, 1], sizes = [3, 222], strides = [1, 1]} : vector<3x256xf32> to vector<3x222xf32>
    %c3 = arith.constant 3 : index
    %c0_4 = arith.constant 0 : index
    %5 = vector.load %arg5[%c3, %c0_4] : memref<27x222xf32, #tpu.memory_space<vmem>>, vector<3x222xf32>
    tpu.vector_store %arg5[%c3, %c0_4], %4 {strides = array<i32>} : memref<27x222xf32, #tpu.memory_space<vmem>>, vector<3x222xf32>,
    %6 = vector.extract_strided_slice %1 {offsets = [0, 2], sizes = [3, 222], strides = [1, 1]} : vector<3x256xf32> to vector<3x222xf32>
    %c6 = arith.constant 6 : index
    %c0_5 = arith.constant 0 : index
    %7 = vector.load %arg5[%c6, %c0_5] : memref<27x222xf32, #tpu.memory_space<vmem>>, vector<3x222xf32>
    tpu.vector_store %arg5[%c6, %c0_5], %6 {strides = array<i32>} : memref<27x222xf32, #tpu.memory_space<vmem>>, vector<3x222xf32>,
    %8 = vector.extract_strided_slice %1 {offsets = [0, 16], sizes = [3, 222], strides = [1, 1]} : vector<3x256xf32> to vector<3x222xf32>
    %c9 = arith.constant 9 : index
    %c0_6 = arith.constant 0 : index
    %9 = vector.load %arg5[%c9, %c0_6] : memref<27x222xf32, #tpu.memory_space<vmem>>, vector<3x222xf32>
    tpu.vector_store %arg5[%c9, %c0_6], %8 {strides = array<i32>} : memref<27x222xf32, #tpu.memory_space<vmem>>, vector<3x222xf32>,
    %10 = vector.extract_strided_slice %1 {offsets = [0, 17], sizes = [3, 222], strides = [1, 1]} : vector<3x256xf32> to vector<3x222xf32>
    %c12 = arith.constant 12 : index
    %c0_7 = arith.constant 0 : index
    %11 = vector.load %arg5[%c12, %c0_7] : memref<27x222xf32, #tpu.memory_space<vmem>>, vector<3x222xf32>
    tpu.vector_store %arg5[%c12, %c0_7], %10 {strides = array<i32>} : memref<27x222xf32, #tpu.memory_space<vmem>>, vector<3x222xf32>,
    %12 = vector.extract_strided_slice %1 {offsets = [0, 18], sizes = [3, 222], strides = [1, 1]} : vector<3x256xf32> to vector<3x222xf32>
    %c15 = arith.constant 15 : index
    %c0_8 = arith.constant 0 : index
    %13 = vector.load %arg5[%c15, %c0_8] : memref<27x222xf32, #tpu.memory_space<vmem>>, vector<3x222xf32>
    tpu.vector_store %arg5[%c15, %c0_8], %12 {strides = array<i32>} : memref<27x222xf32, #tpu.memory_space<vmem>>, vector<3x222xf32>,
    %14 = vector.extract_strided_slice %1 {offsets = [0, 32], sizes = [3, 222], strides = [1, 1]} : vector<3x256xf32> to vector<3x222xf32>
    %c18 = arith.constant 18 : index
    %c0_9 = arith.constant 0 : index
    %15 = vector.load %arg5[%c18, %c0_9] : memref<27x222xf32, #tpu.memory_space<vmem>>, vector<3x222xf32>
    tpu.vector_store %arg5[%c18, %c0_9], %14 {strides = array<i32>} : memref<27x222xf32, #tpu.memory_space<vmem>>, vector<3x222xf32>,
    %16 = vector.extract_strided_slice %1 {offsets = [0, 33], sizes = [3, 222], strides = [1, 1]} : vector<3x256xf32> to vector<3x222xf32>
    %c21 = arith.constant 21 : index
    %c0_10 = arith.constant 0 : index
    %17 = vector.load %arg5[%c21, %c0_10] : memref<27x222xf32, #tpu.memory_space<vmem>>, vector<3x222xf32>
    tpu.vector_store %arg5[%c21, %c0_10], %16 {strides = array<i32>} : memref<27x222xf32, #tpu.memory_space<vmem>>, vector<3x222xf32>,
    %18 = vector.extract_strided_slice %1 {offsets = [0, 34], sizes = [3, 222], strides = [1, 1]} : vector<3x256xf32> to vector<3x222xf32>
    %c24 = arith.constant 24 : index
    %c0_11 = arith.constant 0 : index
    %19 = vector.load %arg5[%c24, %c0_11] : memref<27x222xf32, #tpu.memory_space<vmem>>, vector<3x222xf32>
    tpu.vector_store %arg5[%c24, %c0_11], %18 {strides = array<i32>} : memref<27x222xf32, #tpu.memory_space<vmem>>, vector<3x222xf32>,
    %c0_12 = arith.constant 0 : index
    %c0_13 = arith.constant 0 : index
    %20 = vector.load %arg2[%c0_12, %c0_13] : memref<6x27xf32, #tpu.memory_space<vmem>>, vector<6x27xf32>
    %c0_14 = arith.constant 0 : index
    %c0_15 = arith.constant 0 : index
    %21 = vector.load %arg5[%c0_14, %c0_15] : memref<27x222xf32, #tpu.memory_space<vmem>>, vector<27x222xf32>
    %cst = arith.constant dense<0.000000e+00> : vector<6x222xf32>
    %22 = tpu.matmul %20, %21, %cst {dimension_numbers = #tpu.dot_dimension_numbers<[1], [0], [0], [1], [0, 0, 1, 1], [], []>} : vector<6x27xf32>, vector<27x222xf32>, vector<6x222xf32> -> vector<6x222xf32>
    %c0_16 = arith.constant 0 : index
    %c0_17 = arith.constant 0 : index
    %23 = vector.load %arg3[%c0_16, %c0_17] : memref<6x1xf32, #tpu.memory_space<vmem>>, vector<6x1xf32>
    %24 = vector.broadcast %23 : vector<6x1xf32> to vector<6x222xf32>
    %25 = arith.addf %22, %24 : vector<6x222xf32>
    %26 = vector.extract_strided_slice %25 {offsets = [0, 0], sizes = [6, 14], strides = [1, 1]} : vector<6x222xf32> to vector<6x14xf32>
    %c0_18 = arith.constant 0 : index
    %c0_19 = arith.constant 0 : index
    %c0_20 = arith.constant 0 : index
    %27 = vector.load %arg4[%c0_18, %c0_19, %c0_20] : memref<1x6x196xf32, #tpu.memory_space<vmem>>, vector<1x6x14xf32>
    %28 = vector.shape_cast %27 : vector<1x6x14xf32> to vector<6x14xf32>
    %29 = vector.shape_cast %26 : vector<6x14xf32> to vector<1x6x14xf32>
    tpu.vector_store %arg4[%c0_18, %c0_19, %c0_20], %29 {strides = array<i32>} : memref<1x6x196xf32, #tpu.memory_space<vmem>>, vector<1x6x14xf32>,
    %30 = vector.extract_strided_slice %25 {offsets = [0, 16], sizes = [6, 14], strides = [1, 1]} : vector<6x222xf32> to vector<6x14xf32>
    %c0_21 = arith.constant 0 : index
    %c0_22 = arith.constant 0 : index
    %c14 = arith.constant 14 : index
    %31 = vector.load %arg4[%c0_21, %c0_22, %c14] : memref<1x6x196xf32, #tpu.memory_space<vmem>>, vector<1x6x14xf32>
    %32 = vector.shape_cast %31 : vector<1x6x14xf32> to vector<6x14xf32>
    %33 = vector.shape_cast %30 : vector<6x14xf32> to vector<1x6x14xf32>
    tpu.vector_store %arg4[%c0_21, %c0_22, %c14], %33 {strides = array<i32>} : memref<1x6x196xf32, #tpu.memory_space<vmem>>, vector<1x6x14xf32>,
    %34 = vector.extract_strided_slice %25 {offsets = [0, 32], sizes = [6, 14], strides = [1, 1]} : vector<6x222xf32> to vector<6x14xf32>
    %c0_23 = arith.constant 0 : index
    %c0_24 = arith.constant 0 : index
    %c28 = arith.constant 28 : index
    %35 = vector.load %arg4[%c0_23, %c0_24, %c28] : memref<1x6x196xf32, #tpu.memory_space<vmem>>, vector<1x6x14xf32>
    %36 = vector.shape_cast %35 : vector<1x6x14xf32> to vector<6x14xf32>
    %37 = vector.shape_cast %34 : vector<6x14xf32> to vector<1x6x14xf32>
    tpu.vector_store %arg4[%c0_23, %c0_24, %c28], %37 {strides = array<i32>} : memref<1x6x196xf32, #tpu.memory_space<vmem>>, vector<1x6x14xf32>,
    %38 = vector.extract_strided_slice %25 {offsets = [0, 48], sizes = [6, 14], strides = [1, 1]} : vector<6x222xf32> to vector<6x14xf32>
    %c0_25 = arith.constant 0 : index
    %c0_26 = arith.constant 0 : index
    %c42 = arith.constant 42 : index
    %39 = vector.load %arg4[%c0_25, %c0_26, %c42] : memref<1x6x196xf32, #tpu.memory_space<vmem>>, vector<1x6x14xf32>
    %40 = vector.shape_cast %39 : vector<1x6x14xf32> to vector<6x14xf32>
    %41 = vector.shape_cast %38 : vector<6x14xf32> to vector<1x6x14xf32>
    tpu.vector_store %arg4[%c0_25, %c0_26, %c42], %41 {strides = array<i32>} : memref<1x6x196xf32, #tpu.memory_space<vmem>>, vector<1x6x14xf32>,
    %42 = vector.extract_strided_slice %25 {offsets = [0, 64], sizes = [6, 14], strides = [1, 1]} : vector<6x222xf32> to vector<6x14xf32>
    %c0_27 = arith.constant 0 : index
    %c0_28 = arith.constant 0 : index
    %c56 = arith.constant 56 : index
    %43 = vector.load %arg4[%c0_27, %c0_28, %c56] : memref<1x6x196xf32, #tpu.memory_space<vmem>>, vector<1x6x14xf32>
    %44 = vector.shape_cast %43 : vector<1x6x14xf32> to vector<6x14xf32>
    %45 = vector.shape_cast %42 : vector<6x14xf32> to vector<1x6x14xf32>
    tpu.vector_store %arg4[%c0_27, %c0_28, %c56], %45 {strides = array<i32>} : memref<1x6x196xf32, #tpu.memory_space<vmem>>, vector<1x6x14xf32>,
    %46 = vector.extract_strided_slice %25 {offsets = [0, 80], sizes = [6, 14], strides = [1, 1]} : vector<6x222xf32> to vector<6x14xf32>
    %c0_29 = arith.constant 0 : index
    %c0_30 = arith.constant 0 : index
    %c70 = arith.constant 70 : index
    %47 = vector.load %arg4[%c0_29, %c0_30, %c70] : memref<1x6x196xf32, #tpu.memory_space<vmem>>, vector<1x6x14xf32>
    %48 = vector.shape_cast %47 : vector<1x6x14xf32> to vector<6x14xf32>
    %49 = vector.shape_cast %46 : vector<6x14xf32> to vector<1x6x14xf32>
    tpu.vector_store %arg4[%c0_29, %c0_30, %c70], %49 {strides = array<i32>} : memref<1x6x196xf32, #tpu.memory_space<vmem>>, vector<1x6x14xf32>,
    %50 = vector.extract_strided_slice %25 {offsets = [0, 96], sizes = [6, 14], strides = [1, 1]} : vector<6x222xf32> to vector<6x14xf32>
    %c0_31 = arith.constant 0 : index
    %c0_32 = arith.constant 0 : index
    %c84 = arith.constant 84 : index
    %51 = vector.load %arg4[%c0_31, %c0_32, %c84] : memref<1x6x196xf32, #tpu.memory_space<vmem>>, vector<1x6x14xf32>
    %52 = vector.shape_cast %51 : vector<1x6x14xf32> to vector<6x14xf32>
    %53 = vector.shape_cast %50 : vector<6x14xf32> to vector<1x6x14xf32>
    tpu.vector_store %arg4[%c0_31, %c0_32, %c84], %53 {strides = array<i32>} : memref<1x6x196xf32, #tpu.memory_space<vmem>>, vector<1x6x14xf32>,
    %54 = vector.extract_strided_slice %25 {offsets = [0, 112], sizes = [6, 14], strides = [1, 1]} : vector<6x222xf32> to vector<6x14xf32>
    %c0_33 = arith.constant 0 : index
    %c0_34 = arith.constant 0 : index
    %c98 = arith.constant 98 : index
    %55 = vector.load %arg4[%c0_33, %c0_34, %c98] : memref<1x6x196xf32, #tpu.memory_space<vmem>>, vector<1x6x14xf32>
    %56 = vector.shape_cast %55 : vector<1x6x14xf32> to vector<6x14xf32>
    %57 = vector.shape_cast %54 : vector<6x14xf32> to vector<1x6x14xf32>
    tpu.vector_store %arg4[%c0_33, %c0_34, %c98], %57 {strides = array<i32>} : memref<1x6x196xf32, #tpu.memory_space<vmem>>, vector<1x6x14xf32>,
    %58 = vector.extract_strided_slice %25 {offsets = [0, 128], sizes = [6, 14], strides = [1, 1]} : vector<6x222xf32> to vector<6x14xf32>
    %c0_35 = arith.constant 0 : index
    %c0_36 = arith.constant 0 : index
    %c112 = arith.constant 112 : index
    %59 = vector.load %arg4[%c0_35, %c0_36, %c112] : memref<1x6x196xf32, #tpu.memory_space<vmem>>, vector<1x6x14xf32>
    %60 = vector.shape_cast %59 : vector<1x6x14xf32> to vector<6x14xf32>
    %61 = vector.shape_cast %58 : vector<6x14xf32> to vector<1x6x14xf32>
    tpu.vector_store %arg4[%c0_35, %c0_36, %c112], %61 {strides = array<i32>} : memref<1x6x196xf32, #tpu.memory_space<vmem>>, vector<1x6x14xf32>,
    %62 = vector.extract_strided_slice %25 {offsets = [0, 144], sizes = [6, 14], strides = [1, 1]} : vector<6x222xf32> to vector<6x14xf32>
    %c0_37 = arith.constant 0 : index
    %c0_38 = arith.constant 0 : index
    %c126 = arith.constant 126 : index
    %63 = vector.load %arg4[%c0_37, %c0_38, %c126] : memref<1x6x196xf32, #tpu.memory_space<vmem>>, vector<1x6x14xf32>
    %64 = vector.shape_cast %63 : vector<1x6x14xf32> to vector<6x14xf32>
    %65 = vector.shape_cast %62 : vector<6x14xf32> to vector<1x6x14xf32>
    tpu.vector_store %arg4[%c0_37, %c0_38, %c126], %65 {strides = array<i32>} : memref<1x6x196xf32, #tpu.memory_space<vmem>>, vector<1x6x14xf32>,
    %66 = vector.extract_strided_slice %25 {offsets = [0, 160], sizes = [6, 14], strides = [1, 1]} : vector<6x222xf32> to vector<6x14xf32>
    %c0_39 = arith.constant 0 : index
    %c0_40 = arith.constant 0 : index
    %c140 = arith.constant 140 : index
    %67 = vector.load %arg4[%c0_39, %c0_40, %c140] : memref<1x6x196xf32, #tpu.memory_space<vmem>>, vector<1x6x14xf32>
    %68 = vector.shape_cast %67 : vector<1x6x14xf32> to vector<6x14xf32>
    %69 = vector.shape_cast %66 : vector<6x14xf32> to vector<1x6x14xf32>
    tpu.vector_store %arg4[%c0_39, %c0_40, %c140], %69 {strides = array<i32>} : memref<1x6x196xf32, #tpu.memory_space<vmem>>, vector<1x6x14xf32>,
    %70 = vector.extract_strided_slice %25 {offsets = [0, 176], sizes = [6, 14], strides = [1, 1]} : vector<6x222xf32> to vector<6x14xf32>
    %c0_41 = arith.constant 0 : index
    %c0_42 = arith.constant 0 : index
    %c154 = arith.constant 154 : index
    %71 = vector.load %arg4[%c0_41, %c0_42, %c154] : memref<1x6x196xf32, #tpu.memory_space<vmem>>, vector<1x6x14xf32>
    %72 = vector.shape_cast %71 : vector<1x6x14xf32> to vector<6x14xf32>
    %73 = vector.shape_cast %70 : vector<6x14xf32> to vector<1x6x14xf32>
    tpu.vector_store %arg4[%c0_41, %c0_42, %c154], %73 {strides = array<i32>} : memref<1x6x196xf32, #tpu.memory_space<vmem>>, vector<1x6x14xf32>,
    %74 = vector.extract_strided_slice %25 {offsets = [0, 192], sizes = [6, 14], strides = [1, 1]} : vector<6x222xf32> to vector<6x14xf32>
    %c0_43 = arith.constant 0 : index
    %c0_44 = arith.constant 0 : index
    %c168 = arith.constant 168 : index
    %75 = vector.load %arg4[%c0_43, %c0_44, %c168] : memref<1x6x196xf32, #tpu.memory_space<vmem>>, vector<1x6x14xf32>
    %76 = vector.shape_cast %75 : vector<1x6x14xf32> to vector<6x14xf32>
    %77 = vector.shape_cast %74 : vector<6x14xf32> to vector<1x6x14xf32>
    tpu.vector_store %arg4[%c0_43, %c0_44, %c168], %77 {strides = array<i32>} : memref<1x6x196xf32, #tpu.memory_space<vmem>>, vector<1x6x14xf32>,
    %78 = vector.extract_strided_slice %25 {offsets = [0, 208], sizes = [6, 14], strides = [1, 1]} : vector<6x222xf32> to vector<6x14xf32>
    %c0_45 = arith.constant 0 : index
    %c0_46 = arith.constant 0 : index
    %c182 = arith.constant 182 : index
    %79 = vector.load %arg4[%c0_45, %c0_46, %c182] : memref<1x6x196xf32, #tpu.memory_space<vmem>>, vector<1x6x14xf32>
    %80 = vector.shape_cast %79 : vector<1x6x14xf32> to vector<6x14xf32>
    %81 = vector.shape_cast %78 : vector<6x14xf32> to vector<1x6x14xf32>
    tpu.vector_store %arg4[%c0_45, %c0_46, %c182], %81 {strides = array<i32>} : memref<1x6x196xf32, #tpu.memory_space<vmem>>, vector<1x6x14xf32>,
    return
  }
  func.func @transform_0(%arg0: i32) -> (i32, i32, i32) {
    %c0_i32 = arith.constant 0 : i32
    %c0_i32_0 = arith.constant 0 : i32
    %c0_i32_1 = arith.constant 0 : i32
    return %arg0, %c0_i32, %c0_i32_0 : i32, i32, i32
  }
  func.func @transform_1(%arg0: i32) -> (i32, i32) {
    %c0_i32 = arith.constant 0 : i32
    %c0_i32_0 = arith.constant 0 : i32
    %c0_i32_1 = arith.constant 0 : i32
    return %c0_i32, %c0_i32_0 : i32, i32
  }
  func.func @transform_2(%arg0: i32) -> (i32, i32) {
    %c0_i32 = arith.constant 0 : i32
    %c0_i32_0 = arith.constant 0 : i32
    %c0_i32_1 = arith.constant 0 : i32
    return %c0_i32, %c0_i32_0 : i32, i32
  }
  func.func @transform_3(%arg0: i32) -> (i32, i32, i32) {
    %c0_i32 = arith.constant 0 : i32
    %c0_i32_0 = arith.constant 0 : i32
    %c0_i32_1 = arith.constant 0 : i32
    return %arg0, %c0_i32, %c0_i32_0 : i32, i32, i32
  }
}

</mosaic_0001>

<bundles_post_ra>
// kernel: tpu_custom_call.1
= control target key start
LH: loop header
LB: loop body
LE: loop exit
PB: predicated region body
PF: predicated region fallthrough
CT: control target
= control target key end

     0   :  { %s614_s12 = smov 0   ;;  %s669_s0 = inlined_call_operand.vmem [shape: f32[2,3,256], index: 0, kind: input, shape index: {}]   ;;  %s670_s1 = inlined_call_operand.vmem [shape: f32[6,27], index: 1, kind: input, shape index: {}]   ;;  %s671_s2 = inlined_call_operand.vmem [shape: f32[6,1], index: 2, kind: input, shape index: {}]   ;;  %s672_s3 = inlined_call_operand.vmem [shape: f32[2,6,196], index: 3, kind: output, shape index: {}]  }
   0x1 LB: > { %s507_s13 = sadd.s32 4294967295, %s571_s12   ;;  %p511_p0 = scmp.ge.s32.totalorder %s571_s12, 1  ;;  %s571_s12 = sphi %s614_s12, %s13_s12  }
   0x2   : > { %p137_p1 = scmp.lt.s32.totalorder %s571_s12, 3 }
   0x4   : > { %p138_p2 = pnand %p511_p0, %p137_p1 }
   0x5   : > { %p161_p3 = scmp.lt.s32.totalorder (!%p138_p2), %s507_s13, 1  ;;  %vm176_vm0 = vcmask (!%p138_p2), 763904   ;;  %s573_s18 = smov (!%p138_p2), 126   ;;  %v580_v15 = vmov (!%p138_p2), 0.0   ;;  %v293_v16 = vld [vmem:[%s671_s2] sm:$0x3f] (!%p138_p2) }
   0x6   : > { %141 = sbr.rel (%p138_p2) target bundleno = 531 (0x213), region = 32  ;;  %s574_s19 = smov (!%p138_p2), 127   ;;  %374 = vmatprep.mubr.f32.mxu0 (!%p138_p2), %v580_v15  ;;  %v582_v17 = vmov (!%p138_p2), 0   ;;  %vm197_vm1 = vcmask (!%p138_p2), 1031168   ;;  %vm202_vm2 = vcmask (!%p138_p2), 769030   ;;  %vm205_vm3 = vcmask (!%p138_p2), 761856  }
   0x7   : > { %s575_s20 = smov (!%p138_p2), 112   ;;  %s576_s21 = smov (!%p138_p2), 111   ;;  %562 = vset.pattern.permute.xlu0 (!%p138_p2), %v582_v17  ;;  %vm213_vm4 = vcmask (!%p138_p2), 916480   ;;  %vm218_vm5 = vcmask (!%p138_p2), 764929   ;;  %vm184_vm6 = vcmask (!%p138_p2), 1039360   ;;  %vm189_vm7 = vcmask (!%p138_p2), 766979  }
   0x8   : > { %s577_s22 = smov (!%p138_p2), 110   ;;  %s578_s23 = smov (!%p138_p2), 96   ;;  %vm230_vm8 = vcmask (!%p138_p2), 768004   ;;  %vm225_vm9 = vcmask (!%p138_p2), 908288   ;;  %vm243_vm10 = vcmask (!%p138_p2), 769031   ;;  %vm246_vm11 = vcmask (!%p138_p2), 762880  }
   0x9   : > { %s579_s24 = smov (!%p138_p2), 95   ;;  %s581_s25 = smov (!%p138_p2), 94   ;;  %vm238_vm12 = vcmask (!%p138_p2), 900096   ;;  %vm259_vm13 = vcmask (!%p138_p2), 765954   ;;  %vm254_vm14 = vcmask (!%p138_p2), 785408   ;;  %vm272_vm15 = vcmask (!%p138_p2), 769029  }
   0xa   : > { %v284_v54 = vld [vmem:[%s670_s1] sm:$0x3f] (!%p138_p2)  ;;  %s584_s7 = smov (!%p138_p2), 122   ;;  %s585_s8 = smov (!%p138_p2), 118  }
   0xb   : > { %s586_s9 = smov (!%p138_p2), 124   ;;  %s587_s10 = smov (!%p138_p2), 116  }
   0xc   : > { %s588_s11 = smov (!%p138_p2), 120   ;;  %s591_s15 = smov (!%p138_p2), 102  }
   0xd   : > { %s674_s13 = smov (!%p161_p3, %s507_s13), 1  ;;  %s592_s16 = smov 106  }
   0xe   : > { %s521_s14 = sshll.u32 %s674_s13, 3  ;;  %s522_s30 = sshll.u32 %s674_s13, 4 }
   0xf   : > { %s165_s17 = scalar_lea.vmem %s669_s0, %s521_s14  ;;  %s646_s6 = scalar_lea.vmem %s672_s3, %s522_s30 }
  0x10   : > { %v171_v0 = vld [vmem:[%s165_s17] sm:$0x77]  ;;  %s589_s13 = smov 114   ;;  %s590_s14 = smov 108  }
  0x11   : > { %v191_v1 = vrot.slane %v171_v0, 2  ;;  %175 = vst [vmem:[#allocation2] sm:$0x7] %v171_v0  ;;  %v178_v2 = vrot.slane %v171_v0, 5  ;;  %v173_v3 = vcombine.high %v171_v0, %v171_v0  ;;  %v207_v4 = vrot.slane %v171_v0, 7  ;;  %s593_s17 = smov 104  }
  0x12   : > { %v220_v8 = vcombine.low %v171_v0, %v171_v0  ;;  %v232_v10 = vrot.slane %v171_v0, 1  ;;  %v248_v12 = vrot.slane %v171_v0, 6  ;;  %v261_v14 = vrot.slane %v171_v0, 3 }
  0x13   : > { %193 = vrot.lane.b32.xlu1 %v191_v1, %s573_s18  ;;  %180 = vrot.lane.b32.xlu0 %v178_v2, %s574_s19  ;;  %v192_v5 = vrot.slane %v173_v3, 2  ;;  %177 = vst.msk [vmem:[#allocation2 + $0x8] sm:$0x7] %vm176_vm0, %v173_v3  ;;  %v208_v6 = vrot.slane %v173_v3, 7  ;;  %v179_v7 = vrot.slane %v173_v3, 5  ;;  %v233_v9 = vrot.slane %v173_v3, 1 }
  0x14   : > { %v249_v11 = vrot.slane %v173_v3, 6  ;;  %v262_v13 = vrot.slane %v173_v3, 3 }
  0x17   : > { %209 = vrot.lane.b32.xlu0 %v207_v4, %s575_s20  ;;  %195 = vrot.lane.b32.xlu1 %v192_v5, %s573_s18 }
  0x1b   : > { %211 = vrot.lane.b32.xlu1 %v208_v6, %s575_s20  ;;  %182 = vrot.lane.b32.xlu0 %v179_v7, %s574_s19 }
  0x1f   : > { %223 = vrot.lane.b32.xlu1 %v171_v0, %s576_s21  ;;  %221 = vrot.lane.b32.xlu0 %v220_v8, %s576_s21 }
  0x23   : > { %236 = vrot.lane.b32.xlu1 %v233_v9, %s577_s22  ;;  %234 = vrot.lane.b32.xlu0 %v232_v10, %s577_s22 }
  0x27   : > { %252 = vrot.lane.b32.xlu1 %v249_v11, %s578_s23  ;;  %250 = vrot.lane.b32.xlu0 %v248_v12, %s578_s23 }
  0x2b   : > { %265 = vrot.lane.b32.xlu1 %v262_v13, %s579_s24  ;;  %263 = vrot.lane.b32.xlu0 %v261_v14, %s579_s24 }
  0x2f   : > { %276 = vrot.lane.b32.xlu1 %v173_v3, %s581_s25  ;;  %274 = vrot.lane.b32.xlu0 %v171_v0, %s581_s25 }
  0x33   : > { %296 = vperm.xlu0 %562, %v293_v16  }
  0x85   : > { %v194_v18 = vpop.permute.xlu1 %193  ;;  %v181_v19 = vpop.permute.xlu0 %180 }
  0x89   : > { %v210_v20 = vpop.permute.xlu0 %209  ;;  %v196_v21 = vpop.permute.xlu1 %195 }
  0x8a   : > { %v198_v22 = vsel %vm197_vm1, %v194_v18, %v196_v21  ;;  %203 = vst.msk [vmem:[#allocation2 + $0x8] sm:$0xc0] %vm202_vm2, %v196_v21  ;;  %vm267_vm1 = vcmask 777216   ;;  %vm278_vm2 = vcmask 769024  }
  0x8b   : > { %206 = vst.msk [vmem:[#allocation2 + $0x18] sm:$0x1] %vm205_vm3, %v196_v21  ;;  %201 = vst [vmem:[#allocation2 + $0x10] ss:$-12 sps:$4 sm:$0xc1] %v198_v22   ;;  %vm303_vm3 = vcmask 1042432  }
  0x8d   : > { %v212_v23 = vpop.permute.xlu1 %211  ;;  %v183_v24 = vpop.permute.xlu0 %182 }
  0x8e   : > { %v214_v25 = vsel %vm213_vm4, %v210_v20, %v212_v23  ;;  %219 = vst.msk [vmem:[#allocation2 + $0x18] sm:$0xe] %vm218_vm5, %v212_v23  ;;  %v185_v26 = vsel %vm184_vm6, %v181_v19, %v183_v24  ;;  %vm583_vm4 = vmmov 1   ;;  %vm299_vm6 = vcmask 220160  }
  0x8f   : > { %190 = vst.msk [vmem:[#allocation2 + $0x8] sm:$0x38] %vm189_vm7, %v183_v24  ;;  %217 = vst [vmem:[#allocation2 + $0x10] sm:$0xe] %v214_v25  ;;  %vm387_vm7 = vcmask 226416  }
  0x90   : > { %188 = vst [vmem:[#allocation2] sm:$0x38] %v185_v26  ;;  %vm528_vm5 = vmpackc.low %vm303_vm3, %vm583_vm4  ;;  %vm440_vm3 = vcmask 324816   ;;  %vm445_vm4 = vcmask 439616  }
  0x91   : > { %v224_v27 = vpop.permute.xlu1 %223  ;;  %v222_v28 = vpop.permute.xlu0 %221 }
  0x92   : > { %231 = vst.msk [vmem:[#allocation2 + $0x18] sm:$0x70] %vm230_vm8, %v224_v27  ;;  %v226_v29 = vsel %vm225_vm9, %v222_v28, %v224_v27  ;;  %vm392_vm8 = vcmask 341216   ;;  %vm397_vm9 = vcmask 456016  }
  0x93   : > { %229 = vst [vmem:[#allocation2 + $0x10] sm:$0x70] %v226_v29 }
  0x95   : > { %v237_v30 = vpop.permute.xlu1 %236  ;;  %v235_v31 = vpop.permute.xlu0 %234 }
  0x96   : > { %244 = vst.msk [vmem:[#allocation2 + $0x18] sm:$0x80] %vm243_vm10, %v237_v30  ;;  %v239_v32 = vsel %vm238_vm12, %v235_v31, %v237_v30  ;;  %v286_v38 = vld [vmem:[#allocation2 + $0x8] sm:$0xff]  ;;  %vm402_vm10 = vcmask 570816   ;;  %vm412_vm12 = vcmask 800416  }
  0x97   : > { %247 = vst.msk [vmem:[#allocation2 + $0x28] sm:$0x3] %vm246_vm11, %v237_v30  ;;  %242 = vst [vmem:[#allocation2 + $0x20] ss:$-12 sps:$4 sm:$0x83] %v239_v32   ;;  %v285_v42 = vld [vmem:[#allocation2] sm:$0xff] }
  0x98   : > { %vm407_vm11 = vcmask 685616  }
  0x99   : > { %v253_v33 = vpop.permute.xlu1 %252  ;;  %v251_v34 = vpop.permute.xlu0 %250 }
  0x9a   : > { %260 = vst.msk [vmem:[#allocation2 + $0x28] sm:$0x1c] %vm259_vm13, %v253_v33  ;;  %v255_v35 = vsel %vm254_vm14, %v251_v34, %v253_v33  ;;  %vm417_vm13 = vcmask 915216   ;;  %vm430_vm14 = vcmask 95232  }
  0x9b   : > { %258 = vst [vmem:[#allocation2 + $0x20] sm:$0x1c] %v255_v35 }
  0x9d   : > { %v266_v36 = vpop.permute.xlu1 %265  ;;  %v264_v37 = vpop.permute.xlu0 %263  ;;  %v288_v39 = vld [vmem:[#allocation2 + $0x18] sm:$0xff] }
  0x9e   : > { %273 = vst.msk [vmem:[#allocation2 + $0x28] sm:$0xe0] %vm272_vm15, %v266_v36  ;;  %v268_v40 = vsel %vm267_vm1, %v264_v37, %v266_v36  ;;  %v523_v41 = vpack.c.bf16 %v288_v39, %v286_v38  ;;  %v287_v43 = vld [vmem:[#allocation2 + $0x10] sm:$0xff]  ;;  %vm423_vm15 = vcmask 1030016   ;;  %vm435_vm1 = vcmask 210016  }
  0x9f   : > { %271 = vst [vmem:[#allocation2 + $0x20] sm:$0xe0] %v268_v40  ;;  %v525_v44 = vpack.c.bf16 %v287_v43, %v285_v42 }
  0xa0   : > { %524 = vmatprep.subr.bf16.mxu0 %v523_v41 }
  0xa1   : > { %v277_v45 = vpop.permute.xlu1 %276  ;;  %v275_v46 = vpop.permute.xlu0 %274  ;;  %526 = vmatpush1.bf16.msra.mxu0 %v525_v44 }
  0xa2   : > { %283 = vst.msk [vmem:[#allocation2 + $0x38] sm:$0x7] %vm176_vm0, %v277_v45  ;;  %v279_v47 = vsel %vm278_vm2, %v275_v46, %v277_v45  ;;  %vm381_vm0 = vcmask 111616   ;;  %vm428_vm2 = vcmask 1046512  }
  0xa3   : > { %282 = vst [vmem:[#allocation2 + $0x30] sm:$0x7] %v279_v47 }
  0xa5   : > { %v290_v48 = vld [vmem:[#allocation2 + $0x28] sm:$0xff] }
  0xa6   : > { %v289_v51 = vld [vmem:[#allocation2 + $0x20] sm:$0xff] }
  0xa9   : > { %v292_v49 = vld [vmem:[#allocation2 + $0x38] sm:$0x7] }
  0xaa   : > { %v527_v50 = vpack.c.bf16 %v292_v49, %v290_v48  ;;  %v291_v52 = vld [vmem:[#allocation2 + $0x30] sm:$0x7] }
  0xab   : > { %v530_v53 = vpack.c.bf16 %v291_v52, %v289_v51 }
  0xac   : > { %529 = vmatprep.subr.msk.bf16.mxu0 %vm528_vm5, %v527_v50 }
  0xad   : > { %532 = vmatpush1.bf16.msk.msra.mxu0 %vm528_vm5, %v530_v53  ;;  %vm450_vm5 = vcmask 554416  }
  0xb0   : > { %518 = vmatmul.mubr.msk.f32.vlgmr.msra.gmra.mrb[0].mxu0 %vm299_vm6, %v284_v54 }
  0xb2   : > { %v297_v55 = vpop.permute.xlu0 %296 }
 0x183   : > { %v376_v56 = vpop.f32.mrb[0].mxu0 }
 0x184   : > { %v377_v57 = vadd.f32 %v376_v56, %v297_v55  ;;  %v378_v58 = vpop.f32.mrb[1].mxu0 }
 0x185   : > { %v379_v59 = vadd.f32 %v378_v58, %v297_v55 }
 0x186   : > { %394 = vrot.lane.b32.xlu0 %v377_v57, %s584_s7  ;;  %384 = vrot.lane.b32.xlu1 %v377_v57, %s573_s18  ;;  %382 = vst.msk [vmem:[%s646_s6] sm:$0x3f] %vm381_vm0, %v377_v57 }
 0x18a   : > { %404 = vrot.lane.b32.xlu0 %v377_v57, %s585_s8  ;;  %389 = vrot.lane.b32.xlu1 %v377_v57, %s586_s9 }
 0x18e   : > { %409 = vrot.lane.b32.xlu0 %v377_v57, %s587_s10  ;;  %399 = vrot.lane.b32.xlu1 %v377_v57, %s588_s11 }
 0x192   : > { %414 = vrot.lane.b32.xlu0 %v377_v57, %s589_s13  ;;  %425 = vrot.lane.b32.xlu1 %v379_v59, %s577_s22 }
 0x196   : > { %420 = vrot.lane.b32.xlu0 %v379_v59, %s575_s20  ;;  %432 = vrot.lane.b32.xlu1 %v379_v59, %s590_s14 }
 0x19a   : > { %447 = vrot.lane.b32.xlu0 %v379_v59, %s591_s15  ;;  %437 = vrot.lane.b32.xlu1 %v379_v59, %s592_s16 }
 0x19e   : > { %442 = vrot.lane.b32.xlu1 %v379_v59, %s593_s17 }
 0x1f8   : > { %v395_v60 = vpop.permute.xlu0 %394  ;;  %v385_v61 = vpop.permute.xlu1 %384 }
 0x1f9   : > { %388 = vst.msk [vmem:[%s646_s6] sm:$0x3f] %vm387_vm7, %v385_v61 }
 0x1fc   : > { %v405_v62 = vpop.permute.xlu0 %404  ;;  %v390_v63 = vpop.permute.xlu1 %389 }
 0x1fd   : > { %393 = vst.msk [vmem:[%s646_s6] sm:$0x3f] %vm392_vm8, %v390_v63 }
 0x1fe   : > { %398 = vst.msk [vmem:[%s646_s6] sm:$0x3f] %vm397_vm9, %v395_v60 }
 0x200   : > { %v410_v0 = vpop.permute.xlu0 %409  ;;  %v400_v1 = vpop.permute.xlu1 %399 }
 0x201   : > { %403 = vst.msk [vmem:[%s646_s6] sm:$0x3f] %vm402_vm10, %v400_v1 }
 0x202   : > { %408 = vst.msk [vmem:[%s646_s6] sm:$0x3f] %vm407_vm11, %v405_v62 }
 0x203   : > { %413 = vst.msk [vmem:[%s646_s6] sm:$0x3f] %vm412_vm12, %v410_v0 }
 0x204   : > { %v415_v2 = vpop.permute.xlu0 %414  ;;  %v426_v3 = vpop.permute.xlu1 %425 }
 0x205   : > { %418 = vst.msk [vmem:[%s646_s6] sm:$0x3f] %vm417_vm13, %v415_v2 }
 0x206   : > { %431 = vst.msk [vmem:[%s646_s6 + $0x8] sm:$0x3f] %vm430_vm14, %v426_v3 }
 0x208   : > { %v421_v4 = vpop.permute.xlu0 %420  ;;  %v433_v5 = vpop.permute.xlu1 %432 }
 0x209   : > { %424 = vst.msk [vmem:[%s646_s6] sm:$0x3f] %vm423_vm15, %v421_v4 }
 0x20a   : > { %436 = vst.msk [vmem:[%s646_s6 + $0x8] sm:$0x3f] %vm435_vm1, %v433_v5 }
 0x20b   : > { %429 = vst.msk [vmem:[%s646_s6] sm:$0x3f] %vm428_vm2, %v426_v3 }
 0x20c   : > { %v438_v6 = vpop.permute.xlu1 %437  ;;  %v448_v8 = vpop.permute.xlu0 %447 }
 0x20d   : > { %441 = vst.msk [vmem:[%s646_s6 + $0x8] sm:$0x3f] %vm440_vm3, %v438_v6 }
 0x210   : > { %v443_v7 = vpop.permute.xlu1 %442 }
 0x211   : > { %446 = vst.msk [vmem:[%s646_s6 + $0x8] sm:$0x3f] %vm445_vm4, %v443_v7 }
 0x212   : > { %451 = vst.msk [vmem:[%s646_s6 + $0x8] sm:$0x3f] %vm450_vm5, %v448_v8 }
 0x213 PF: > { %s13_s12 = sadd.s32 1, %s571_s12  }
 0x214   : > { %p10_p4 = scmp.ge.s32.totalorder %s13_s12, 4  }
 0x216   :  { %12 = sbr.rel (!%p10_p4) target bundleno = 1 (0x1), region = 62 }

</bundles_post_ra>
